<compile_context>
chip_gen: v6e
topology: v6e:2x2x1
jax: 0.10.0
libtpu: 0.0.40
codegen_flags: <defaults>
</compile_context>

<pallas_src>
import math
import functools

import jax
import jax.numpy as jnp
import numpy as np
from jax import lax
from jax.experimental import pallas as pl
from jax.experimental.pallas import tpu as pltpu


# ---------------------------------------------------------------------------
# Kernel 1: K/V projection for the full sequence (once per batch, stored bf16)
# ---------------------------------------------------------------------------
def kv_proj_kernel(x_ref, wk_ref, wv_ref, bk_ref, bv_ref, k_ref, v_ref):
    xb = x_ref[0].astype(jnp.bfloat16)                               # (T, F)
    k = jnp.dot(xb, wk_ref[...], preferred_element_type=jnp.float32) + bk_ref[...]
    v = jnp.dot(xb, wv_ref[...], preferred_element_type=jnp.float32) + bv_ref[...]
    k_ref[0] = k.astype(jnp.bfloat16)
    v_ref[0] = v.astype(jnp.bfloat16)


# ---------------------------------------------------------------------------
# Kernel 2: fused block for one query tile
# ---------------------------------------------------------------------------
def transformer_block_kernel(
    xq_ref, kf_ref, vf_ref, pad_ref,
    wq_ref, bq_ref, wo_ref, bo_ref,
    ln1g_ref, ln1b_ref,
    w1_ref, b1_ref, w2_ref, b2_ref,
    ln2g_ref, ln2b_ref,
    o_ref,
    *, n_heads, ff_chunk):
    TQ = xq_ref.shape[1]          # query rows handled by this grid step
    S = kf_ref.shape[1]           # full sequence length (keys / values)
    F = xq_ref.shape[2]
    H = n_heads
    D = F // H

    qi = pl.program_id(1)

    xq = xq_ref[0]                # (TQ, F) f32 -- kept f32 for the residual
    kf = kf_ref[0]                # (S,  F) bf16 -- precomputed K (all heads)
    vf = vf_ref[0]                # (S,  F) bf16 -- precomputed V (all heads)
    pad = pad_ref[0]              # (1,  S) f32 -- nonzero => padded key

    # ---- full-width Q projection: one (TQ,F)@(F,F) MXU matmul ----
    scale = jnp.float32(1.0 / math.sqrt(D))
    q_full = jnp.dot(xq.astype(jnp.bfloat16), wq_ref[...],
                     preferred_element_type=jnp.float32) + bq_ref[...]
    qs = (q_full * scale).astype(jnp.bfloat16)        # fold 1/sqrt(D) into q

    # ---- additive mask bias, computed once per tile ----
    q0 = qi * TQ
    row = q0 + lax.broadcasted_iota(jnp.int32, (TQ, S), 0)   # global query idx
    col = lax.broadcasted_iota(jnp.int32, (TQ, S), 1)        # global key idx
    key_padded = pad != 0.0                                   # (1, S)
    masked = jnp.logical_or(col > row, key_padded)            # future OR padded
    # NOTE: -inf masking keeps exact torch parity (incl. NaN for rows whose
    # whole visible key window is padded, as in the PyTorch reference).
    mask_bias = jnp.where(masked, jnp.float32(-jnp.inf), jnp.float32(0.0))
    all_padded = jnp.all(key_padded)

    # ---- per-head attention on lane slices of the full-width Q/K/V ----
    # TODO(synk): for large H switch this static loop to lax.fori_loop with a
    # scratch accumulator to bound vreg live ranges.
    head_outs = []
    for h in range(H):
        lo = h * D
        q_h = qs[:, lo:lo + D]                                # (TQ, D) bf16
        k_h = kf[:, lo:lo + D]                                # (S,  D) bf16
        v_h = vf[:, lo:lo + D]                                # (S,  D) bf16
        # q @ k^T without an explicit transpose (contract on last dims).
        w = lax.dot_general(q_h, k_h, (((1,), (1,)), ((), ())),
                            preferred_element_type=jnp.float32)   # (TQ, S)
        w = w + mask_bias
        w = w - jnp.max(w, axis=-1, keepdims=True)
        e = jnp.exp(w)
        denom = jnp.sum(e, axis=-1, keepdims=True)
        p = e * pl.reciprocal(denom, approx=True)
        # torch: zero the attention rows only when ALL keys are padded
        p = jnp.where(all_padded, jnp.float32(0.0), p)
        head_outs.append(jnp.dot(p.astype(jnp.bfloat16), v_h,
                                 preferred_element_type=jnp.float32))  # (TQ, D)

    # lane-contiguous concat of head outputs -> single (TQ,F)@(F,F) out-proj
    attn_cat = jnp.concatenate(head_outs, axis=-1).astype(jnp.bfloat16)
    attn = jnp.dot(attn_cat, wo_ref[...],
                   preferred_element_type=jnp.float32) + bo_ref[...]

    # TODO(synk): dropout layers (attn/ff/block) are identity (inference mode).

    # ---- residual + LayerNorm 1 (f32 elementwise) ----
    h1 = xq + attn
    mu = jnp.mean(h1, axis=-1, keepdims=True)
    var = jnp.mean((h1 - mu) ** 2, axis=-1, keepdims=True)
    h1n = (h1 - mu) * lax.rsqrt(var + 1e-5) * ln1g_ref[...] + ln1b_ref[...]

    # ---- FeedForward, hidden (4F) axis chunked to bound the live f32 tile ----
    # TODO(synk): for very large F, also stream w1/w2 chunks via a grid axis
    # instead of keeping them fully resident in VMEM.
    h1n_b = h1n.astype(jnp.bfloat16)
    FH = w1_ref.shape[1]
    c_gelu = jnp.float32(math.sqrt(2.0 / math.pi))
    acc = jnp.zeros((TQ, F), jnp.float32)
    for c0 in range(0, FH, ff_chunk):
        g_in = jnp.dot(h1n_b, w1_ref[:, pl.ds(c0, ff_chunk)],
                       preferred_element_type=jnp.float32) \
               + b1_ref[:, pl.ds(c0, ff_chunk)]
        g = 0.5 * g_in * (1.0 + jnp.tanh(c_gelu * (g_in + 0.044715 * g_in ** 3)))
        acc = acc + jnp.dot(g.astype(jnp.bfloat16), w2_ref[pl.ds(c0, ff_chunk), :],
                            preferred_element_type=jnp.float32)
    f = acc + b2_ref[...]

    # ---- residual + LayerNorm 2 ----
    h2 = h1n + f
    mu2 = jnp.mean(h2, axis=-1, keepdims=True)
    var2 = jnp.mean((h2 - mu2) ** 2, axis=-1, keepdims=True)
    o_ref[0] = (h2 - mu2) * lax.rsqrt(var2 + 1e-5) * ln2g_ref[...] + ln2b_ref[...]


def pack_params(p, n_heads):
    """Torch-convention f32 params -> pre-transposed bf16 weights
    (biases + LN params stay f32)."""
    F = p["wout"].shape[0]
    wq, wk, wv = jnp.split(p["wqkv"], 3, axis=0)        # each (F_out, F_in)
    bq, bk, bv = jnp.split(p["bqkv"].reshape(-1), 3)    # each (F,)
    t = lambda w: jnp.transpose(w).astype(jnp.bfloat16)  # (out,in) -> (in,out)
    return {
        "wq": t(wq), "wk": t(wk), "wv": t(wv),
        "bq": bq.reshape(1, F), "bk": bk.reshape(1, F), "bv": bv.reshape(1, F),
        "wo": t(p["wout"]), "bo": p["bout"].reshape(1, F),
        "ln1g": p["ln1g"].reshape(1, F), "ln1b": p["ln1b"].reshape(1, F),
        "w1": t(p["w1"]), "b1": p["b1"].reshape(1, -1),     # (F, 4F)
        "w2": t(p["w2"]), "b2": p["b2"].reshape(1, F),      # (4F, F)
        "ln2g": p["ln2g"].reshape(1, F), "ln2b": p["ln2b"].reshape(1, F),
    }


def transformer_block(x, padding_mask, params, n_heads, *, q_tile=None,
                      kv_tile=None):
    """x: (B, S, F) f32; padding_mask: (B, S) (nonzero => padded key)."""
    B, S, F = x.shape
    assert F % n_heads == 0
    if q_tile is None:
        q_tile = min(S, 256)      # >=128 (full MXU rows); S when shorter
    if kv_tile is None:
        kv_tile = min(S, 256)
    assert S % q_tile == 0 and S % kv_tile == 0

    ff_chunk = 4 * F if 4 * F <= 512 else 512
    assert (4 * F) % ff_chunk == 0

    pad = padding_mask.astype(jnp.float32).reshape(B, 1, S)
    pp = pack_params(params, n_heads)

    def const_spec(a):
        nd = a.ndim
        # constant block index -> single-buffered resident weights
        return pl.BlockSpec(a.shape, lambda b, i: (0,) * nd,
                            pipeline_mode=pl.Buffered(1))

    # ---------------- K/V projection (once per batch, stored bf16) ----------
    kv_weights = [pp["wk"], pp["wv"], pp["bk"], pp["bv"]]
    kv_flops = 4 * B * S * F * F
    kv_bytes = B * S * F * 4 + 4 * F * F + 2 * B * S * F * 2
    k_full, v_full = pl.pallas_call(
        kv_proj_kernel,
        out_shape=(jax.ShapeDtypeStruct((B, S, F), jnp.bfloat16),
                   jax.ShapeDtypeStruct((B, S, F), jnp.bfloat16)),
        grid=(B, S // kv_tile),
        in_specs=[pl.BlockSpec((1, kv_tile, F), lambda b, i: (b, i, 0))]
                 + [const_spec(a) for a in kv_weights],
        out_specs=(pl.BlockSpec((1, kv_tile, F), lambda b, i: (b, i, 0)),
                   pl.BlockSpec((1, kv_tile, F), lambda b, i: (b, i, 0))),
        compiler_params=pltpu.CompilerParams(
            dimension_semantics=("parallel", "parallel"),
            vmem_limit_bytes=32 * 1024 * 1024),
        cost_estimate=pl.CostEstimate(flops=kv_flops, transcendentals=0,
                                      bytes_accessed=kv_bytes),
    )(x, *kv_weights)

    # ---------------- fused attention + FFN block ---------------------------
    weight_names = ["wq", "bq", "wo", "bo", "ln1g", "ln1b",
                    "w1", "b1", "w2", "b2", "ln2g", "ln2b"]
    weights = [pp[n] for n in weight_names]

    in_specs = [
        pl.BlockSpec((1, q_tile, F), lambda b, qi: (b, qi, 0)),   # query tile
        pl.BlockSpec((1, S, F), lambda b, qi: (b, 0, 0)),         # K (full seq)
        pl.BlockSpec((1, S, F), lambda b, qi: (b, 0, 0)),         # V (full seq)
        pl.BlockSpec((1, 1, S), lambda b, qi: (b, 0, 0)),         # padding mask
    ] + [const_spec(a) for a in weights]

    weight_bytes = 2 * (2 * F * F + 8 * F * F)                    # wq, wo, w1, w2
    flops = B * (2 * S * F * F        # Q proj
                 + 4 * S * S * F      # QK^T + PV over all heads
                 + 2 * S * F * F      # out proj
                 + 16 * S * F * F)    # FFN
    transcendentals = B * (n_heads * S * S + S * 4 * F)
    bytes_accessed = (B * S * F * 4 + 2 * B * S * F * 2 + B * S * 4
                      + weight_bytes + B * S * F * 4)

    vmem_est = (weight_bytes                       # single-buffered bf16 weights
                + 2 * q_tile * F * 4               # query tile (x2 buffers, f32)
                + 2 * 2 * S * F * 2                # K + V blocks (x2 buffers)
                + 2 * q_tile * F * 4               # output tile (x2 buffers)
                + 4 * q_tile * S * 4               # score / softmax live tiles
                + 2 * q_tile * ff_chunk * 4)       # FFN chunk intermediates
    vmem_limit = int(min(40 * 1024 * 1024, max(32 * 1024 * 1024, 2 * vmem_est)))

    kernel = functools.partial(transformer_block_kernel,
                               n_heads=n_heads, ff_chunk=ff_chunk)
    out = pl.pallas_call(
        kernel,
        out_shape=jax.ShapeDtypeStruct((B, S, F), jnp.float32),
        grid=(B, S // q_tile),
        in_specs=in_specs,
        out_specs=pl.BlockSpec((1, q_tile, F), lambda b, qi: (b, qi, 0)),
        compiler_params=pltpu.CompilerParams(
            dimension_semantics=("parallel", "parallel"),
            vmem_limit_bytes=vmem_limit),
        cost_estimate=pl.CostEstimate(flops=flops,
                                      transcendentals=transcendentals,
                                      bytes_accessed=bytes_accessed),
    )(x, k_full, v_full, pad, *weights)
    # TransformerBlock.forward returns (x, padding_mask) + contexts
    return out, padding_mask
    # TODO(synk): the contexts / `weight` mixing branch is not implemented
    # (only the self-attention path x, padding_mask with weight=None).


def init_params(key, n_features):
    F = n_features
    ks = jax.random.split(key, 8)
    std = 0.02
    return {
        # attention (torch Linear convention: W is (out, in))
        "wqkv": std * jax.random.normal(ks[0], (3 * F, F), jnp.float32),
        "bqkv": jnp.zeros((1, 3 * F), jnp.float32),
        "wout": std * jax.random.normal(ks[1], (F, F), jnp.float32),
        "bout": jnp.zeros((1, F), jnp.float32),
        # layer norms (torch defaults: weight=1, bias=0, eps=1e-5)
        "ln1g": jnp.ones((1, F), jnp.float32),
        "ln1b": jnp.zeros((1, F), jnp.float32),
        "ln2g": jnp.ones((1, F), jnp.float32),
        "ln2b": jnp.zeros((1, F), jnp.float32),
        # feed forward (middle = 4*F)
        "w1": std * jax.random.normal(ks[2], (4 * F, F), jnp.float32),
        "b1": jnp.zeros((1, 4 * F), jnp.float32),
        "w2": std * jax.random.normal(ks[3], (F, 4 * F), jnp.float32),
        "b2": jnp.zeros((1, F), jnp.float32),
    }


def reference(x, padding_mask, p, n_heads):
    """Pure-JAX f32 mirror of the PyTorch forward (eval mode)."""
    B, S, F = x.shape
    D = F // n_heads
    qkv = x @ p["wqkv"].T + p["bqkv"]
    q, k, v = jnp.split(qkv, 3, axis=-1)
    sh = lambda t: t.reshape(B, S, n_heads, D).transpose(0, 2, 1, 3)
    q, k, v = sh(q), sh(k), sh(v)
    w = jnp.einsum("bhqd,bhkd->bhqk", q, k) / math.sqrt(D)
    fut = jnp.triu(jnp.ones((S, S), bool), 1)
    w = jnp.where(fut[None, None], -jnp.inf, w)
    pm = padding_mask.astype(bool)
    w = jnp.where(pm[:, None, None, :], -jnp.inf, w)
    w = jax.nn.softmax(w, axis=-1)
    w = jnp.where(jnp.all(pm, axis=-1)[:, None, None, None], 0.0, w)
    a = jnp.einsum("bhqk,bhkd->bhqd", w, v).transpose(0, 2, 1, 3).reshape(B, S, F)
    a = a @ p["wout"].T + p["bout"]

    def ln(t, g, b):
        mu = t.mean(-1, keepdims=True)
        var = ((t - mu) ** 2).mean(-1, keepdims=True)
        return (t - mu) / jnp.sqrt(var + 1e-5) * g + b

    h1 = ln(x + a, p["ln1g"], p["ln1b"])
    gi = h1 @ p["w1"].T + p["b1"]
    c = math.sqrt(2.0 / math.pi)
    g = 0.5 * gi * (1.0 + jnp.tanh(c * (gi + 0.044715 * gi ** 3)))
    f = g @ p["w2"].T + p["b2"]
    return ln(h1 + f, p["ln2g"], p["ln2b"])


if __name__ == "__main__":
    # n_features=128 (lane-dense), n_heads=4 (head dim 32), ff hidden=512
    B, S, F, H = 2, 16, 128, 4

    key = jax.random.PRNGKey(0)
    kx, kp = jax.random.split(key)
    x = jax.random.normal(kx, (B, S, F), jnp.float32)
    # pad out the last four positions of the second sequence
    padding_mask = jnp.zeros((B, S), jnp.int32).at[1, 12:].set(1)
    params = init_params(kp, F)

    out, _ = transformer_block(x, padding_mask, params, H)
    out = jax.block_until_ready(out)

    ref = reference(x, padding_mask, params, H)
    # kernel runs the matmuls in bf16 (f32 accumulation); compare loosely
    np.testing.assert_allclose(np.asarray(out), np.asarray(ref),
                               rtol=2e-2, atol=2e-2)
    print("KERNEL_OK")
</pallas_src>

<mosaic_0001>
module attributes {stable_mosaic.version = 11 : i64} {
  func.func @kv_proj_kernel(%arg0: i32, %arg1: i32, %arg2: memref<1x16x128xf32, #tpu.memory_space<vmem>>, %arg3: memref<128x128xbf16, #tpu.memory_space<vmem>>, %arg4: memref<128x128xbf16, #tpu.memory_space<vmem>>, %arg5: memref<1x128xf32, #tpu.memory_space<vmem>>, %arg6: memref<1x128xf32, #tpu.memory_space<vmem>>, %arg7: memref<1x16x128xbf16, #tpu.memory_space<vmem>>, %arg8: memref<1x16x128xbf16, #tpu.memory_space<vmem>>) attributes {dimension_semantics = [#tpu.dimension_semantics<parallel>, #tpu.dimension_semantics<parallel>], iteration_bounds = array<i64: 2, 1>, scalar_prefetch = 0 : i64, scratch_operands = 0 : i64, tpu.core_type = #tpu.core_type<tc>, window_params = [{transform_indices = @transform_0, window_bounds = array<i64: 1, 16, 128>}, {pipeline_mode = #tpu.pipeline_mode<synchronous>, transform_indices = @transform_1, window_bounds = array<i64: 128, 128>}, {pipeline_mode = #tpu.pipeline_mode<synchronous>, transform_indices = @transform_2, window_bounds = array<i64: 128, 128>}, {pipeline_mode = #tpu.pipeline_mode<synchronous>, transform_indices = @transform_3, window_bounds = array<i64: 1, 128>}, {pipeline_mode = #tpu.pipeline_mode<synchronous>, transform_indices = @transform_4, window_bounds = array<i64: 1, 128>}, {transform_indices = @transform_5, window_bounds = array<i64: 1, 16, 128>}, {transform_indices = @transform_6, window_bounds = array<i64: 1, 16, 128>}]} {
    %c0 = arith.constant 0 : index
    %c0_0 = arith.constant 0 : index
    %c0_1 = arith.constant 0 : index
    %0 = vector.load %arg2[%c0, %c0_0, %c0_1] : memref<1x16x128xf32, #tpu.memory_space<vmem>>, vector<1x16x128xf32>
    %1 = vector.shape_cast %0 : vector<1x16x128xf32> to vector<16x128xf32>
    %2 = arith.truncf %1 : vector<16x128xf32> to vector<16x128xbf16>
    %c0_2 = arith.constant 0 : index
    %c0_3 = arith.constant 0 : index
    %3 = vector.load %arg3[%c0_2, %c0_3] : memref<128x128xbf16, #tpu.memory_space<vmem>>, vector<128x128xbf16>
    %cst = arith.constant dense<0.000000e+00> : vector<16x128xf32>
    %4 = tpu.matmul %2, %3, %cst {dimension_numbers = #tpu.dot_dimension_numbers<[1], [0], [0], [1], [0, 0, 1, 1], [], []>} : vector<16x128xbf16>, vector<128x128xbf16>, vector<16x128xf32> -> vector<16x128xf32>
    %c0_4 = arith.constant 0 : index
    %c0_5 = arith.constant 0 : index
    %5 = vector.load %arg5[%c0_4, %c0_5] : memref<1x128xf32, #tpu.memory_space<vmem>>, vector<1x128xf32>
    %6 = vector.broadcast %5 : vector<1x128xf32> to vector<16x128xf32>
    %7 = arith.addf %4, %6 : vector<16x128xf32>
    %c0_6 = arith.constant 0 : index
    %c0_7 = arith.constant 0 : index
    %8 = vector.load %arg4[%c0_6, %c0_7] : memref<128x128xbf16, #tpu.memory_space<vmem>>, vector<128x128xbf16>
    %cst_8 = arith.constant dense<0.000000e+00> : vector<16x128xf32>
    %9 = tpu.matmul %2, %8, %cst_8 {dimension_numbers = #tpu.dot_dimension_numbers<[1], [0], [0], [1], [0, 0, 1, 1], [], []>} : vector<16x128xbf16>, vector<128x128xbf16>, vector<16x128xf32> -> vector<16x128xf32>
    %c0_9 = arith.constant 0 : index
    %c0_10 = arith.constant 0 : index
    %10 = vector.load %arg6[%c0_9, %c0_10] : memref<1x128xf32, #tpu.memory_space<vmem>>, vector<1x128xf32>
    %11 = vector.broadcast %10 : vector<1x128xf32> to vector<16x128xf32>
    %12 = arith.addf %9, %11 : vector<16x128xf32>
    %13 = arith.truncf %7 : vector<16x128xf32> to vector<16x128xbf16>
    %c0_11 = arith.constant 0 : index
    %c0_12 = arith.constant 0 : index
    %c0_13 = arith.constant 0 : index
    %14 = vector.load %arg7[%c0_11, %c0_12, %c0_13] : memref<1x16x128xbf16, #tpu.memory_space<vmem>>, vector<1x16x128xbf16>
    %15 = vector.shape_cast %14 : vector<1x16x128xbf16> to vector<16x128xbf16>
    %16 = vector.shape_cast %13 : vector<16x128xbf16> to vector<1x16x128xbf16>
    tpu.vector_store %arg7[%c0_11, %c0_12, %c0_13], %16 {strides = array<i32>} : memref<1x16x128xbf16, #tpu.memory_space<vmem>>, vector<1x16x128xbf16>,
    %17 = arith.truncf %12 : vector<16x128xf32> to vector<16x128xbf16>
    %c0_14 = arith.constant 0 : index
    %c0_15 = arith.constant 0 : index
    %c0_16 = arith.constant 0 : index
    %18 = vector.load %arg8[%c0_14, %c0_15, %c0_16] : memref<1x16x128xbf16, #tpu.memory_space<vmem>>, vector<1x16x128xbf16>
    %19 = vector.shape_cast %18 : vector<1x16x128xbf16> to vector<16x128xbf16>
    %20 = vector.shape_cast %17 : vector<16x128xbf16> to vector<1x16x128xbf16>
    tpu.vector_store %arg8[%c0_14, %c0_15, %c0_16], %20 {strides = array<i32>} : memref<1x16x128xbf16, #tpu.memory_space<vmem>>, vector<1x16x128xbf16>,
    return
  }
  func.func @transform_0(%arg0: i32, %arg1: i32) -> (i32, i32, i32) {
    %c0_i32 = arith.constant 0 : i32
    %c0_i32_0 = arith.constant 0 : i32
    return %arg0, %arg1, %c0_i32 : i32, i32, i32
  }
  func.func @transform_1(%arg0: i32, %arg1: i32) -> (i32, i32) {
    %c0_i32 = arith.constant 0 : i32
    %c0_i32_0 = arith.constant 0 : i32
    %c0_i32_1 = arith.constant 0 : i32
    return %c0_i32, %c0_i32_0 : i32, i32
  }
  func.func @transform_2(%arg0: i32, %arg1: i32) -> (i32, i32) {
    %c0_i32 = arith.constant 0 : i32
    %c0_i32_0 = arith.constant 0 : i32
    %c0_i32_1 = arith.constant 0 : i32
    return %c0_i32, %c0_i32_0 : i32, i32
  }
  func.func @transform_3(%arg0: i32, %arg1: i32) -> (i32, i32) {
    %c0_i32 = arith.constant 0 : i32
    %c0_i32_0 = arith.constant 0 : i32
    %c0_i32_1 = arith.constant 0 : i32
    return %c0_i32, %c0_i32_0 : i32, i32
  }
  func.func @transform_4(%arg0: i32, %arg1: i32) -> (i32, i32) {
    %c0_i32 = arith.constant 0 : i32
    %c0_i32_0 = arith.constant 0 : i32
    %c0_i32_1 = arith.constant 0 : i32
    return %c0_i32, %c0_i32_0 : i32, i32
  }
  func.func @transform_5(%arg0: i32, %arg1: i32) -> (i32, i32, i32) {
    %c0_i32 = arith.constant 0 : i32
    %c0_i32_0 = arith.constant 0 : i32
    return %arg0, %arg1, %c0_i32 : i32, i32, i32
  }
  func.func @transform_6(%arg0: i32, %arg1: i32) -> (i32, i32, i32) {
    %c0_i32 = arith.constant 0 : i32
    %c0_i32_0 = arith.constant 0 : i32
    return %arg0, %arg1, %c0_i32 : i32, i32, i32
  }
}

</mosaic_0001>

<bundles_post_ra>
// kernel: tpu_custom_call.1
= control target key start
LH: loop header
LB: loop body
LE: loop exit
PB: predicated region body
PF: predicated region fallthrough
CT: control target
= control target key end

     0   :  { %s1470_s0 = inlined_call_operand.hbm [shape: f32[2,16,128], index: 0, kind: input, shape index: {}]   ;;  %s1471_s1 = inlined_call_operand.hbm [shape: bf16[128,128], index: 1, kind: input, shape index: {}]   ;;  %s1472_s2 = inlined_call_operand.hbm [shape: bf16[128,128], index: 2, kind: input, shape index: {}]   ;;  %s1473_s3 = inlined_call_operand.vmem [shape: f32[1,128], index: 3, kind: input, shape index: {}]   ;;  %s1474_s4 = inlined_call_operand.vmem [shape: f32[1,128], index: 4, kind: input, shape index: {}]   ;;  %s1475_s5 = inlined_call_operand.hbm [shape: bf16[2,16,128], index: 5, kind: output, shape index: {0}]   ;;  %s1476_s6 = inlined_call_operand.hbm [shape: bf16[2,16,128], index: 6, kind: output, shape index: {1}]  }
   0x1   :  { %1480 = sst [smem:[#allocation15_spill]] %s1471_s1 }
   0x2   :  { %1481 = sst [smem:[#allocation16_spill]] %s1472_s2 }
   0x3   :  { %12 = vsyncpa [#allocation3], 0 }
   0x4   :  { %14 = vsyncpa [#allocation3 + $0x1], 0 }
   0x5   :  { %15 = vsyncpa [#allocation6], 0 }
   0x6   :  { %16 = vsyncpa [#allocation4], 0 }
   0x7   :  { %18 = vsyncpa [#allocation4 + $0x1], 0 }
   0x8   :  { %19 = vsyncpa [#allocation10], 0 }
   0x9   :  { %21 = vsyncpa [#allocation10 + $0x1], 0  ;;  %s1237_s21 = smov 0   ;;  %s1239_s22 = smov 0  }
   0xa   :  { %s1241_s23 = smov 0   ;;  %s1243_s24 = smov 0  }
   0xb   :  { %s1245_s25 = smov 0   ;;  %s1247_s26 = smov 0  }
   0xc LB: > { %s761_s27 = sadd.s32 4294967295, %s1187_s26   ;;  %s762_s28 = sadd.s32 4294967294, %s1187_s26   ;;  %s1187_s26 = sphi %s1247_s26, %s27_s26   ;;  %s1183_s25 = sphi %s1245_s25, %s1500_s25   ;;  %s1179_s24 = sphi %s1243_s24, %s1499_s24   ;;  %s1175_s23 = sphi %s1241_s23, %s1498_s23   ;;  %s1171_s22 = sphi %s1239_s22, %s1497_s22   ;;  %s1167_s21 = sphi %s1237_s21, %s1496_s21  }
   0xd   : > { %p61_p0 = scmp.ne.s32.totalorder %s1171_s22, %s1167_s21  ;;  %p1271_p1 = scmp.eq.s32.totalorder %s761_s27, 0 }
   0xe   : > { %p1275_p2 = scmp.eq.s32.totalorder %s761_s27, 1  ;;  %p177_p3 = scmp.eq.s32.totalorder %s762_s28, 1 }
   0xf   : > { %s1482_s29 = scalar_select %p1271_p1, 1, 0 }
  0x10   : > { %p1281_p4 = por %p1271_p1, %p61_p0  ;;  %p763_p5 = scmp.ge.s32.totalorder %s1187_s26, 1 }
  0x11   : > { %p1286_p6 = por %p177_p3, %p61_p0  ;;  %p212_p7 = scmp.lt.s32.totalorder %s1187_s26, 3 }
  0x12   : > { %s1484_s7 = scalar_select %p1281_p4, 1, 0 }
  0x13   : > { %s1485_s8 = scalar_select %p1286_p6, 1, 0 }
  0x14   : > { %p1291_p8 = pnand %p763_p5, %p212_p7  ;;  %s1189_s10 = smov [#allocation5]  }
  0x15   : > { %s224_s11 = sshll.u32 %s1189_s10, 4  ;;  %s1190_s13 = smov [#allocation7]   ;;  %s225_s11 = int_to_ptr.vmem [resolvable:$true] %s224_s11 }
  0x16   : > { %p895_p9 = pneg %p1291_p8  ;;  %s237_s14 = sshll.u32 %s1190_s13, 4  ;;  %s238_s14 = int_to_ptr.vmem [resolvable:$true] %s237_s14 }
  0x17   : > { %s1004_s15 = scalar_lea.vmem %s225_s11, 1024  ;;  %p1012_p5 = scmp.lt.s32.totalorder %s225_s11, %s225_s11 }
  0x18   : > { %p1300_p11 = pnand %p895_p9, %p1271_p1  ;;  %p1005_p13 = scmp.ne.s32.totalorder %s225_s11, %s1004_s15 }
  0x19   : > { %p1013_p7 = scmp.lt.s32.totalorder %s1004_s15, %s1004_s15 }
  0x1a   : > { %p995_p12 = pneg %p1300_p11 }
  0x1b   : > { %p1014_p10 = por %p1013_p7, %p1012_p5 }
  0x1c   : > { %p1007_p0 = pnand %p1005_p13, %p995_p12 }
  0x1e   : > { %p1008_p3 = pneg %p1007_p0 }
  0x20   : > { %p1015_p9 = pnand %p1014_p10, %p1008_p3 }
  0x22   : > { %1018 = shalt.err (!%p1015_p9)
}
  0x23   : > { %s1191_s16 = smov 64   ;;  %s1192_s17 = smov 4  }
  0x24   : > { %s1488_s1 = sld [smem:[#allocation15_spill]]  ;;  %s1030_s20 = scalar_lea.vmem %s238_s14, 1024 }
  0x25   : > { %p1031_p6 = scmp.ne.s32.totalorder %s238_s14, %s1030_s20  ;;  %p1038_p1 = scmp.lt.s32.totalorder %s238_s14, %s238_s14 }
  0x26   : > { %p1039_p4 = scmp.lt.s32.totalorder %s1030_s20, %s1030_s20 }
  0x27   : > { %p1033_p13 = pnand %p1031_p6, %p995_p12 }
  0x28   : > { %p1040_p5 = por %p1039_p4, %p1038_p1 }
  0x29   : > { %p1034_p0 = pneg %p1033_p13 }
  0x2a   : > { %898 = dma.hbm_to_vmem [thread:$0]  (!%p1300_p11), %s1488_s1, 1024, %s225_s11, [#allocation6], %s1191_s16, %s1191_s16, %s1192_s17  }
  0x2b   : > { %p1041_p10 = pnand %p1040_p5, %p1034_p0 }
  0x2d   : > { %1044 = shalt.err (!%p1041_p10)
}
  0x2e   : > { %s1489_s2 = sld [smem:[#allocation16_spill]]  ;;  %s39_s10 = sadd.s32 1, %s1183_s25 }
  0x2f   : > { %s48_s11 = sadd.s32 1, %s1175_s23  ;;  %p41_p1 = scmp.ge.s32.totalorder %s39_s10, 2 }
  0x30   : > { %p55_p4 = scmp.ne.s32.totalorder %s1175_s23, %s1171_s22  ;;  %p56_p6 = scmp.eq.s32.totalorder %s1187_s26, 0 }
  0x31   : > { %p915_p12 = scmp.lt.s32.totalorder %s1187_s26, 2  ;;  %s1502_s10 = smov (%p41_p1, %s39_s10), 0 }
  0x32   : > { %p57_p3 = por %p56_p6, %p55_p4  ;;  %p1332_p7 = por %p1275_p2, %p55_p4 }
  0x33   : > { %s43_s13 = ssub.s32 %s1183_s25, %s1502_s10  ;;  %s257_s15 = sand.u32 1, %s1175_s23  }
  0x34   : > { %901 = dma.hbm_to_vmem [thread:$0]  (!%p1300_p11), %s1489_s2, 1024, %s238_s14, [#allocation6], %s1191_s16, %s1191_s16, %s1192_s17  }
  0x35   : > { %p46_p9 = scmp.eq.s32.totalorder %s43_s13, 0  ;;  %s767_s14 = sshll.u32 %s257_s15, 4 }
  0x36   : > { %s806_s16 = sshll.u32 %s1183_s25, 8  ;;  %s261_s27 = scalar_lea.vmem [#allocation2], %s767_s14 }
  0x37   : > { %s1341_s17 = scalar_select %p46_p9, %s1175_s23, %s48_s11  }
  0x38   : > { %s269_s20 = scalar_lea.hbm %s1470_s0, %s806_s16  ;;  %s270_s28 = sshll.u32 %s261_s27, 4  ;;  %s271_s28 = int_to_ptr.vmem [resolvable:$true] %s270_s28 }
  0x39   : > { %p1348_p11 = pnand %p915_p12, %p57_p3  ;;  %s258_s1 = scalar_lea.sflag [#allocation3], %s257_s15 }
  0x3a   : > { %s1058_s13 = scalar_lea.vmem %s271_s28, 256  ;;  %s1193_s11 = smov [#allocation2]  }
  0x3b   : > { %p1047_p2 = pneg %p1348_p11  ;;  %p1059_p13 = scmp.ne.s32.totalorder %s271_s28, %s1058_s13 }
  0x3c   : > { %s1063_s2 = sshll.u32 %s1193_s11, 4  ;;  %s1064_s2 = int_to_ptr.vmem [resolvable:$false] %s1063_s2 }
  0x3d   : > { %p1061_p0 = pnand %p1059_p13, %p1047_p2  ;;  %s1065_s16 = scalar_lea.vmem %s1064_s2, 512 }
  0x3e   : > { %p1066_p10 = scmp.lt.s32.totalorder %s271_s28, %s1064_s2  ;;  %p1067_p1 = scmp.lt.s32.totalorder %s1065_s16, %s1058_s13 }
  0x3f   : > { %p1062_p5 = pneg %p1061_p0 }
  0x40   : > { %p1068_p4 = por %p1067_p1, %p1066_p10 }
  0x42   : > { %p1069_p6 = pnand %p1068_p4, %p1062_p5 }
  0x44   : > { %1072 = shalt.err (!%p1069_p6)
}
  0x45   : > { %s1194_s14 = smov 128   ;;  %s1195_s18 = smov 8  }
  0x46   : > { %905 = dma.hbm_to_vmem [thread:$0]  (!%p1348_p11), %s269_s20, 256, %s271_s28, %s258_s1, %s1194_s14, %s1194_s14, %s1195_s18  }
  0x47   : > { %282 = sbr.rel (%p1291_p8) target bundleno = 351 (0x15f), region = 40  ;;  %s1359_s15 = sand.u32 (!%p1291_p8), 1, %s1171_s22  }
  0x48   : > { %s771_s19 = sshll.u32 (!%p1291_p8), %s1359_s15, 4  ;;  %s285_s2 = scalar_lea.sflag (!%p1291_p8), [#allocation3], %s1359_s15 }
  0x49   : > { %s1363_s27 = scalar_lea.vmem (!%p1291_p8), [#allocation2], %s771_s19  ;;  %p1492_p12 = scmp.ne.s32.totalorder (!%p1291_p8), %s1484_s7, 0 }
  0x4c   : > { %1150 = dma.done.wait (%p1492_p12), %s285_s2, 256  }
  0x4d   : > { %1152 = vsyncadd (%p1492_p12), %s285_s2, 4294967040  ;;  %p1493_p3 = scmp.ne.s32.totalorder %s1482_s29, 0 }
  0x4f   : > { %1154 = dma.done.wait (%p1493_p3), [#allocation6], 2048  }
  0x50   : > { %1156 = vsyncadd (%p1493_p3), [#allocation6], 4294965248  ;;  %v1196_v0 = vmov 0.0   ;;  %vm1197_vm0 = vmmov 0   ;;  %v977_v1 = vld [vmem:[#allocation5 + $0x38] sm:$0xff]   ;;  %v979_v3 = vld [vmem:[#allocation5 + $0x30] sm:$0xff]  }
  0x51   : > { %841 = vmatprep.subr.bf16.mxu0 %v1196_v0  ;;  %861 = vmatprep.subr.bf16.mxu1 %v1196_v0  ;;  %v978_v2 = vld [vmem:[#allocation7 + $0x38] sm:$0xff]   ;;  %v980_v4 = vld [vmem:[#allocation7 + $0x30] sm:$0xff]   ;;  %v981_v5 = vld [vmem:[#allocation5 + $0x28] sm:$0xff]   ;;  %s774_s1 = sshll.u32 %s1359_s15, 3  ;;  %s811_s16 = sshll.u32 %s1179_s24, 7 }
  0x52   : > { %857 = vmatprep.mubr.msk.bf16.mxu0 %vm1197_vm0, %v1196_v0  ;;  %877 = vmatprep.mubr.msk.bf16.mxu1 %vm1197_vm0, %v1196_v0  ;;  %v982_v6 = vld [vmem:[#allocation7 + $0x28] sm:$0xff]   ;;  %v983_v7 = vld [vmem:[#allocation5 + $0x20] sm:$0xff]   ;;  %v985_v9 = vld [vmem:[#allocation5 + $0x18] sm:$0xff]   ;;  %s322_s9 = scalar_lea.vmem [#allocation8], %s774_s1  ;;  %s329_s28 = scalar_lea.vmem [#allocation9], %s774_s1 }
  0x53   : > { %842 = vmatpush3.bf16.msra.mxu0 %v977_v1  ;;  %862 = vmatpush3.bf16.msra.mxu1 %v978_v2  ;;  %v984_v8 = vld [vmem:[#allocation7 + $0x20] sm:$0xff]   ;;  %v986_v10 = vld [vmem:[#allocation7 + $0x18] sm:$0xff]   ;;  %v987_v11 = vld [vmem:[#allocation5 + $0x10] sm:$0xff]   ;;  %s602_s20 = sshll.u32 %s322_s9, 4  ;;  %s620_s30 = sshll.u32 %s329_s28, 4  ;;  %s1383_s20 = int_to_ptr.vmem [resolvable:$true] %s602_s20  ;;  %s1385_s30 = int_to_ptr.vmem [resolvable:$true] %s620_s30 }
  0x54   : > { %843 = vmatprep.subr.bf16.mxu0 %v1196_v0  ;;  %863 = vmatprep.subr.bf16.mxu1 %v1196_v0  ;;  %v988_v12 = vld [vmem:[#allocation7 + $0x10] sm:$0xff]   ;;  %v989_v13 = vld [vmem:[#allocation5 + $0x8] sm:$0xff]   ;;  %v991_v15 = vld [vmem:[#allocation5] sm:$0xff]   ;;  %s1390_s19 = scalar_lea.hbm %s1475_s5, %s811_s16  ;;  %s582_s1 = scalar_lea.sflag [#allocation4], %s1359_s15 }
  0x55   : > { %v990_v14 = vld [vmem:[#allocation7 + $0x8] sm:$0xff]   ;;  %v334_v16 = vld [vmem:[%s1363_s27] sm:$0xff]  ;;  %s1073_s29 = scalar_lea.vmem %s1383_s20, 128  ;;  %s1198_s7 = smov [#allocation8]  }
  0x56   : > { %v335_v17 = vld [vmem:[%s1363_s27 + $0x8] sm:$0xff]  ;;  %v992_v18 = vld [vmem:[#allocation7] sm:$0xff]   ;;  %s1395_s27 = scalar_lea.hbm %s1476_s6, %s811_s16  ;;  %p1074_p8 = scmp.ne.s32.totalorder %s1383_s20, %s1073_s29 }
  0x57   : > { %844 = vmatpush3.bf16.msra.mxu0 %v979_v3  ;;  %864 = vmatpush3.bf16.msra.mxu1 %v980_v4  ;;  %v336_v19 = vpack.c.bf16 %v335_v17, %v334_v16  ;;  %v776_v22 = vld [vmem:[%s1473_s3] ss:$0 sm:$0xff]  ;;  %s1077_s13 = sshll.u32 %s1198_s7, 4  ;;  %s1078_s13 = int_to_ptr.vmem [resolvable:$false] %s1077_s13 }
  0x58   : > { %845 = vmatprep.subr.bf16.mxu0 %v1196_v0  ;;  %865 = vmatprep.subr.bf16.mxu1 %v1196_v0  ;;  %v785_v24 = vld [vmem:[%s1474_s4] ss:$0 sm:$0xff]  ;;  %p1075_p9 = pnand %p1074_p8, %p1332_p7  ;;  %s1079_s11 = scalar_lea.vmem %s1078_s13, 256 }
  0x59   : > { %p1080_p2 = scmp.lt.s32.totalorder %s1383_s20, %s1078_s13  ;;  %p1081_p13 = scmp.lt.s32.totalorder %s1079_s11, %s1073_s29 }
  0x5a   : > { %p1076_p11 = pneg %p1075_p9 }
  0x5b   : > { %846 = vmatpush3.bf16.msra.mxu0 %v981_v5  ;;  %866 = vmatpush3.bf16.msra.mxu1 %v982_v6  ;;  %p1082_p0 = por %p1081_p13, %p1080_p2 }
  0x5c   : > { %847 = vmatprep.subr.bf16.mxu0 %v1196_v0  ;;  %867 = vmatprep.subr.bf16.mxu1 %v1196_v0 }
  0x5d   : > { %p1083_p5 = pnand %p1082_p0, %p1076_p11 }
  0x5f   : > { %848 = vmatpush3.bf16.msra.mxu0 %v983_v7  ;;  %868 = vmatpush3.bf16.msra.mxu1 %v984_v8 }
  0x60   : > { %849 = vmatprep.subr.bf16.mxu0 %v1196_v0  ;;  %869 = vmatprep.subr.bf16.mxu1 %v1196_v0 }
  0x63   : > { %850 = vmatpush3.bf16.msra.mxu0 %v985_v9  ;;  %870 = vmatpush3.bf16.msra.mxu1 %v986_v10 }
  0x64   : > { %851 = vmatprep.subr.bf16.mxu0 %v1196_v0  ;;  %871 = vmatprep.subr.bf16.mxu1 %v1196_v0 }
  0x67   : > { %852 = vmatpush3.bf16.msra.mxu0 %v987_v11  ;;  %872 = vmatpush3.bf16.msra.mxu1 %v988_v12 }
  0x68   : > { %853 = vmatprep.subr.bf16.mxu0 %v1196_v0  ;;  %873 = vmatprep.subr.bf16.mxu1 %v1196_v0 }
  0x6b   : > { %854 = vmatpush3.bf16.msra.mxu0 %v989_v13  ;;  %874 = vmatpush3.bf16.msra.mxu1 %v990_v14 }
  0x6c   : > { %855 = vmatprep.subr.bf16.mxu0 %v1196_v0  ;;  %875 = vmatprep.subr.bf16.mxu1 %v1196_v0 }
  0x6f   : > { %856 = vmatpush3.bf16.msra.mxu0 %v991_v15  ;;  %876 = vmatpush3.bf16.msra.mxu1 %v992_v18 }
  0x72   : > { %858 = vmatmul.mubr.bf16.vlgmr.msra.gmra.mxu0 %v336_v19  ;;  %878 = vmatmul.mubr.bf16.vlgmr.msra.gmra.mxu1 %v336_v19 }
 0x132   : > { %v442_v20 = vpop.f32.mrf.mxu0  ;;  %v554_v21 = vpop.f32.mrf.mxu1 }
 0x133   : > { %v443_v27 = vadd.f32 %v776_v22, %v442_v20  ;;  %v555_v30 = vadd.f32 %v785_v24, %v554_v21 }
 0x134   : > { %v859_v23 = vpop.f32.mrf.mxu0  ;;  %v879_v25 = vpop.f32.mrf.mxu1 }
 0x136   : > { %v445_v26 = vpop.f32.mrf.mxu0  ;;  %v557_v29 = vpop.f32.mrf.mxu1 }
 0x137   : > { %v446_v28 = vadd.f32 %v776_v22, %v445_v26  ;;  %v558_v31 = vadd.f32 %v785_v24, %v557_v29 }
 0x138   : > { %v860_v32 = vpop.f32.mrf.mxu0  ;;  %v880_v34 = vpop.f32.mrf.mxu1 }
 0x139   : > { %v816_v33 = vpack.c.bf16 %v446_v28, %v443_v27  ;;  %v821_v35 = vpack.c.bf16 %v558_v31, %v555_v30 }
 0x13b   : > { %817 = vst [vmem:[%s322_s9] sm:$0xff] %v816_v33   ;;  %822 = vst [vmem:[%s329_s28] sm:$0xff] %v821_v35  }
 0x13c   : > { %1086 = shalt.err (!%p1083_p5)
}
 0x13d   : > { %s1087_s9 = scalar_lea.hbm %s1390_s19, 128  ;;  %s1091_s14 = scalar_lea.hbm %s1475_s5, 256 }
 0x13e   : > { %p1088_p10 = scmp.ne.s32.totalorder %s1390_s19, %s1087_s9  ;;  %p1092_p6 = scmp.lt.s32.totalorder %s1390_s19, %s1475_s5 }
 0x13f   : > { %p1093_p12 = scmp.lt.s32.totalorder %s1091_s14, %s1087_s9 }
 0x140   : > { %p1089_p1 = pnand %p1088_p10, %p1332_p7 }
 0x141   : > { %p1094_p3 = por %p1093_p12, %p1092_p6 }
 0x142   : > { %p1090_p4 = pneg %p1089_p1 }
 0x144   : > { %p1095_p8 = pnand %p1094_p3, %p1090_p4 }
 0x146   : > { %1098 = shalt.err (!%p1095_p8)
}
 0x147   : > { %s1199_s2 = smov 64   ;;  %s1200_s29 = smov 4  }
 0x148   : > { %891 = dma.vmem_to_hbm [thread:$0]  (%p1332_p7), %s1383_s20, 128, %s1390_s19, %s582_s1, %s1199_s2, %s1199_s2, %s1200_s29  }
 0x149   : > { %s587_s7 = scalar_lea.sflag [#allocation10], %s1359_s15  ;;  %s1099_s13 = scalar_lea.vmem %s1385_s30, 128 }
 0x14a   : > { %p1100_p9 = scmp.ne.s32.totalorder %s1385_s30, %s1099_s13  ;;  %s1201_s11 = smov [#allocation9]  }
 0x14b   : > { %s1103_s9 = sshll.u32 %s1201_s11, 4  ;;  %s1104_s9 = int_to_ptr.vmem [resolvable:$false] %s1103_s9 }
 0x14c   : > { %p1101_p11 = pnand %p1100_p9, %p1332_p7  ;;  %s1105_s28 = scalar_lea.vmem %s1104_s9, 256 }
 0x14d   : > { %p1106_p13 = scmp.lt.s32.totalorder %s1385_s30, %s1104_s9  ;;  %p1107_p0 = scmp.lt.s32.totalorder %s1105_s28, %s1099_s13 }
 0x14e   : > { %p1102_p2 = pneg %p1101_p11 }
 0x14f   : > { %p1108_p5 = por %p1107_p0, %p1106_p13 }
 0x151   : > { %p1109_p10 = pnand %p1108_p5, %p1102_p2 }
 0x153   : > { %1112 = shalt.err (!%p1109_p10)
}
 0x154   : > { %s1113_s20 = scalar_lea.hbm %s1395_s27, 128  ;;  %s1117_s1 = scalar_lea.hbm %s1476_s6, 256 }
 0x155   : > { %p1114_p1 = scmp.ne.s32.totalorder %s1395_s27, %s1113_s20  ;;  %p1118_p12 = scmp.lt.s32.totalorder %s1395_s27, %s1476_s6 }
 0x156   : > { %p1119_p3 = scmp.lt.s32.totalorder %s1117_s1, %s1113_s20 }
 0x157   : > { %p1115_p4 = pnand %p1114_p1, %p1332_p7 }
 0x158   : > { %p1120_p8 = por %p1119_p3, %p1118_p12 }
 0x159   : > { %p1116_p6 = pneg %p1115_p4 }
 0x15b   : > { %p1121_p9 = pnand %p1120_p8, %p1116_p6 }
 0x15d   : > { %1124 = shalt.err (!%p1121_p9)
}
 0x15e   : > { %892 = dma.vmem_to_hbm [thread:$0]  (%p1332_p7), %s1385_s30, 128, %s1395_s27, %s587_s7, %s1199_s2, %s1199_s2, %s1200_s29  }
 0x15f PF: > { %s635_s18 = sand.u32 1, %s1167_s21   ;;  %p1494_p11 = scmp.ne.s32.totalorder %s1485_s8, 0 }
 0x160   : > { %p1495_p2 = scmp.ge.s32.totalorder %s1187_s26, 2  ;;  %s636_s24 = scalar_lea.sflag [#allocation4], %s635_s18 }
 0x162   : > { %p907_p13 = pnand %p1495_p2, %p1494_p11 }
 0x164   : > { %p908_p0 = pneg %p907_p13 }
 0x166   : > { %1158 = dma.done.wait (%p908_p0), %s636_s24, 128  }
 0x167   : > { %1160 = vsyncadd (%p908_p0), %s636_s24, 4294967168  ;;  %s645_s13 = scalar_lea.sflag [#allocation10], %s635_s18 }
 0x168   : > { %1162 = dma.done.wait (%p908_p0), %s645_s13, 128  }
 0x169   : > { %1164 = vsyncadd (%p908_p0), %s645_s13, 4294967168  ;;  %s27_s26 = sadd.s32 1, %s1187_s26   ;;  %s1496_s21 = smov %s1171_s22 }
 0x16a   : > { %p24_p5 = scmp.ge.s32.totalorder %s27_s26, 4   ;;  %s1497_s22 = smov %s1175_s23 }
 0x16b   : > { %s1498_s23 = smov %s1341_s17  ;;  %s1499_s24 = smov %s1183_s25 }
 0x16c   : > { %s1500_s25 = smov %s1502_s10  ;;  %26 = sbr.rel (!%p24_p5) target bundleno = 12 (0xc), region = 110 }
 0x171   :  { %650 = vsyncpa [#allocation3], 1 }
 0x172   :  { %652 = vsyncpa [#allocation3 + $0x1], 1 }
 0x173   :  { %653 = vsyncpa [#allocation6], 1 }
 0x174   :  { %654 = vsyncpa [#allocation4], 1 }
 0x175   :  { %656 = vsyncpa [#allocation4 + $0x1], 1 }
 0x176   :  { %657 = vsyncpa [#allocation10], 1 }
 0x177   :  { %659 = vsyncpa [#allocation10 + $0x1], 1 }

</bundles_post_ra>
